<compile_context>
chip_gen: v5e
topology: v5e:2x2
jax: 0.10.0
libtpu: 0.0.40
codegen_flags: <defaults>
</compile_context>

<pallas_src>
import functools

import jax
import jax.numpy as jnp
from jax.experimental import pallas as pl
from jax.experimental.pallas import tpu as pltpu


def _round_up(x, m):
    return ((x + m - 1) // m) * m


def _kmeans_dist_kernel(x_ref, c_ref, cn_ref, o_ref):
    # x_ref : (TN, D_pad)   row tile of flattened features
    # c_ref : (k_pad, D_pad) full (padded) centroid table, resident each step
    # cn_ref: (1, k_pad)    precomputed ||c||^2 (f32)
    # o_ref : (TN, k_pad)   squared distances (lane-dense)
    x = x_ref[...]                                        # (TN, D_pad)
    c = c_ref[...]                                        # (k_pad, D_pad)

    xf = x.astype(jnp.float32)
    x_norm = jnp.sum(xf * xf, axis=-1, keepdims=True)     # (TN, 1), XLU reduce

    # cross term on the MXU, contracting the feature axis of both operands
    # (no explicit transpose), accumulating in f32.
    cross = jax.lax.dot_general(
        x, c,
        dimension_numbers=(((1,), (1,)), ((), ())),
        preferred_element_type=jnp.float32,
    )                                                     # (TN, k_pad)

    o_ref[...] = (x_norm + cn_ref[...] - 2.0 * cross).astype(o_ref.dtype)


@functools.partial(jax.jit, static_argnames=("block_n",))
def kmean_cluster_forward(features, Ck, *, block_n=512):
    """features: (B, S, D), Ck: (1, k, D) -> (B, S, k) squared distances."""
    B, S, D = features.shape
    k = Ck.shape[1]
    N = B * S

    # Lane-dense / MXU-friendly padding.
    D_pad = _round_up(D, 128)
    k_pad = _round_up(k, 128)

    # Row tile: multiple of 8, clamped for tiny problems; pad N to a multiple
    # of the tile so no hard divisibility assert is needed.
    bn = _round_up(max(8, min(block_n, _round_up(N, 8))), 8)
    N_pad = _round_up(N, bn)

    x = features.reshape(N, D)
    c = Ck.reshape(k, D)

    x = jnp.pad(x, ((0, N_pad - N), (0, D_pad - D)))
    c = jnp.pad(c, ((0, k_pad - k), (0, D_pad - D)))

    # Hoisted centroid norms: computed once, passed as a (1, k_pad) vector.
    c_norm = jnp.sum(c.astype(jnp.float32) ** 2, axis=-1)[None, :]   # (1, k_pad)

    out = pl.pallas_call(
        _kmeans_dist_kernel,
        out_shape=jax.ShapeDtypeStruct((N_pad, k_pad), features.dtype),
        grid_spec=pltpu.PrefetchScalarGridSpec(
            num_scalar_prefetch=0,
            grid=(N_pad // bn,),
            in_specs=[
                pl.BlockSpec((bn, D_pad), lambda i: (i, 0)),
                pl.BlockSpec((k_pad, D_pad), lambda i: (0, 0)),
                pl.BlockSpec((1, k_pad), lambda i: (0, 0)),
            ],
            out_specs=pl.BlockSpec((bn, k_pad), lambda i: (i, 0)),
        ),
        compiler_params=pltpu.CompilerParams(
            dimension_semantics=("parallel",),
        ),
    )(x, c, c_norm)

    return out[:N, :k].reshape(B, S, k)


def reference_forward(features, Ck):
    B, S, D = features.shape
    k = Ck.shape[1]
    f = features.reshape(B * S, 1, D)
    return ((f - Ck) ** 2).sum(axis=2).reshape(B, S, k)


if __name__ == "__main__":
    key = jax.random.PRNGKey(0)
    k_feat, k_ck = jax.random.split(key)

    B, S, D, K = 2, 8, 32, 16
    features = jax.random.normal(k_feat, (B, S, D), dtype=jnp.float32)
    # deterministic centroid buffer, same shape as the registered buffer Ck
    Ck = jax.random.normal(k_ck, (1, K, D), dtype=jnp.float32)

    out = kmean_cluster_forward(features, Ck)
    out = jax.block_until_ready(out)

    ref = reference_forward(features, Ck)
    assert out.shape == (B, S, K), out.shape
    assert out.dtype == features.dtype
    # NOTE: the MXU form re-associates the sum (||x||^2 + ||c||^2 - 2<x,c>),
    # so allow slightly looser tolerances than exact elementwise parity.
    assert jnp.allclose(out, ref, rtol=1e-4, atol=1e-3), "mismatch vs reference"

    print("KERNEL_OK")
</pallas_src>

<mosaic_0001>
module attributes {stable_mosaic.version = 11 : i64} {
  func.func @_kmeans_dist_kernel(%arg0: i32, %arg1: memref<16x128xf32, #tpu.memory_space<vmem>>, %arg2: memref<128x128xf32, #tpu.memory_space<vmem>>, %arg3: memref<1x128xf32, #tpu.memory_space<vmem>>, %arg4: memref<16x128xf32, #tpu.memory_space<vmem>>) attributes {dimension_semantics = [#tpu.dimension_semantics<parallel>], iteration_bounds = array<i64: 1>, scalar_prefetch = 0 : i64, scratch_operands = 0 : i64, tpu.core_type = #tpu.core_type<tc>, window_params = [{transform_indices = @transform_0, window_bounds = array<i64: 16, 128>}, {pipeline_mode = #tpu.pipeline_mode<synchronous>, transform_indices = @transform_1, window_bounds = array<i64: 128, 128>}, {pipeline_mode = #tpu.pipeline_mode<synchronous>, transform_indices = @transform_2, window_bounds = array<i64: 1, 128>}, {transform_indices = @transform_3, window_bounds = array<i64: 16, 128>}]} {
    %c0 = arith.constant 0 : index
    %c0_0 = arith.constant 0 : index
    %0 = vector.load %arg1[%c0, %c0_0] : memref<16x128xf32, #tpu.memory_space<vmem>>, vector<16x128xf32>
    %c0_1 = arith.constant 0 : index
    %c0_2 = arith.constant 0 : index
    %1 = vector.load %arg2[%c0_1, %c0_2] : memref<128x128xf32, #tpu.memory_space<vmem>>, vector<128x128xf32>
    %2 = arith.mulf %0, %0 : vector<16x128xf32>
    %cst = arith.constant dense<0.000000e+00> : vector<16xf32>
    %3 = vector.multi_reduction <add>, %2, %cst [1] : vector<16x128xf32> to vector<16xf32>
    %4 = vector.shape_cast %3 : vector<16xf32> to vector<16x1xf32>
    %cst_3 = arith.constant dense<0.000000e+00> : vector<16x128xf32>
    %5 = tpu.matmul %0, %1, %cst_3 {dimension_numbers = #tpu.dot_dimension_numbers<[1], [1], [0], [0], [0, 0, 1, 0], [], []>} : vector<16x128xf32>, vector<128x128xf32>, vector<16x128xf32> -> vector<16x128xf32>
    %c0_4 = arith.constant 0 : index
    %c0_5 = arith.constant 0 : index
    %6 = vector.load %arg3[%c0_4, %c0_5] : memref<1x128xf32, #tpu.memory_space<vmem>>, vector<1x128xf32>
    %7 = vector.broadcast %4 : vector<16x1xf32> to vector<16x128xf32>
    %8 = vector.broadcast %6 : vector<1x128xf32> to vector<16x128xf32>
    %9 = arith.addf %7, %8 : vector<16x128xf32>
    %cst_6 = arith.constant 2.000000e+00 : f32
    %10 = vector.broadcast %cst_6 : f32 to vector<16x128xf32>
    %11 = arith.mulf %10, %5 : vector<16x128xf32>
    %12 = arith.subf %9, %11 : vector<16x128xf32>
    %c0_7 = arith.constant 0 : index
    %c0_8 = arith.constant 0 : index
    %13 = vector.load %arg4[%c0_7, %c0_8] : memref<16x128xf32, #tpu.memory_space<vmem>>, vector<16x128xf32>
    tpu.vector_store %arg4[%c0_7, %c0_8], %12 {strides = array<i32>} : memref<16x128xf32, #tpu.memory_space<vmem>>, vector<16x128xf32>,
    return
  }
  func.func @transform_0(%arg0: i32) -> (i32, i32) {
    %c0_i32 = arith.constant 0 : i32
    %c0_i32_0 = arith.constant 0 : i32
    return %arg0, %c0_i32 : i32, i32
  }
  func.func @transform_1(%arg0: i32) -> (i32, i32) {
    %c0_i32 = arith.constant 0 : i32
    %c0_i32_0 = arith.constant 0 : i32
    %c0_i32_1 = arith.constant 0 : i32
    return %c0_i32, %c0_i32_0 : i32, i32
  }
  func.func @transform_2(%arg0: i32) -> (i32, i32) {
    %c0_i32 = arith.constant 0 : i32
    %c0_i32_0 = arith.constant 0 : i32
    %c0_i32_1 = arith.constant 0 : i32
    return %c0_i32, %c0_i32_0 : i32, i32
  }
  func.func @transform_3(%arg0: i32) -> (i32, i32) {
    %c0_i32 = arith.constant 0 : i32
    %c0_i32_0 = arith.constant 0 : i32
    return %arg0, %c0_i32 : i32, i32
  }
}

</mosaic_0001>

<bundles_post_ra>
// kernel: kmean_cluster_forward.1
= control target key start
LH: loop header
LB: loop body
LE: loop exit
PB: predicated region body
PF: predicated region fallthrough
CT: control target
= control target key end

     0   :  { %s177_s1 = inlined_call_operand.vmem [shape: f32[128,128], index: 1, kind: input, shape index: {}]   ;;  %s178_s2 = inlined_call_operand.vmem [shape: f32[1,128], index: 2, kind: input, shape index: {}]   ;;  %s179_s0 = inlined_call_operand.vmem [shape: f32[16,128], index: 0, kind: input, shape index: {}]   ;;  %s180_s3 = inlined_call_operand.vmem [shape: f32[16,128], index: 3, kind: output, shape index: {}]  }
   0x1   :  { %v31_v0 = vld [vmem:[%s177_s1 + $0x78] sm:$0xff]  ;;  %v30_v1 = vld [vmem:[%s177_s1 + $0x70] sm:$0xff]  ;;  %v29_v2 = vld [vmem:[%s177_s1 + $0x68] sm:$0xff] }
   0x2   :  { %38 = vmatpush.xpose.msra.mxu0 %v31_v0  ;;  %77 = vmatpush.xpose.msra.mxu1 %v31_v0  ;;  %v28_v3 = vld [vmem:[%s177_s1 + $0x60] sm:$0xff]  ;;  %v27_v4 = vld [vmem:[%s177_s1 + $0x58] sm:$0xff]  ;;  %v26_v5 = vld [vmem:[%s177_s1 + $0x50] sm:$0xff] }
   0x3   :  { %v25_v6 = vld [vmem:[%s177_s1 + $0x48] sm:$0xff]  ;;  %v24_v7 = vld [vmem:[%s177_s1 + $0x40] sm:$0xff]  ;;  %v23_v9 = vld [vmem:[%s177_s1 + $0x38] sm:$0xff] }
   0x4   :  { %v14_v8 = vld [vmem:[%s179_s0] sm:$0xff]  ;;  %v22_v11 = vld [vmem:[%s177_s1 + $0x30] sm:$0xff]  ;;  %v15_v12 = vld [vmem:[%s179_s0 + $0x8] sm:$0xff] }
   0x5   :  { %v32_v10 = vmul.f32 %v14_v8, %v14_v8  ;;  %v21_v13 = vld [vmem:[%s177_s1 + $0x28] sm:$0xff]  ;;  %v33_v14 = vmul.f32 %v15_v12, %v15_v12  ;;  %v20_v15 = vld [vmem:[%s177_s1 + $0x20] sm:$0xff]  ;;  %v19_v16 = vld [vmem:[%s177_s1 + $0x18] sm:$0xff] }
   0x6   :  { %39 = vmatpush.xpose.msra.mxu0 %v30_v1  ;;  %78 = vmatpush.xpose.msra.mxu1 %v30_v1  ;;  %v18_v17 = vld [vmem:[%s177_s1 + $0x10] sm:$0xff]  ;;  %v17_v18 = vld [vmem:[%s177_s1 + $0x8] sm:$0xff]  ;;  %v16_v19 = vld [vmem:[%s177_s1] sm:$0xff] }
   0x7   :  { %34 = vadd.xlane.f32.xlu0 %v32_v10  ;;  %v93_v22 = vld [vmem:[%s178_s2] ss:$0 sm:$0xff] }
   0xa   :  { %40 = vmatpush.xpose.msra.mxu0 %v29_v2  ;;  %79 = vmatpush.xpose.msra.mxu1 %v29_v2 }
   0xe   :  { %41 = vmatpush.xpose.msra.mxu0 %v28_v3  ;;  %80 = vmatpush.xpose.msra.mxu1 %v28_v3 }
   0xf   :  { %36 = vadd.xlane.f32.xlu0 %v33_v14 }
  0x12   :  { %42 = vmatpush.xpose.msra.mxu0 %v27_v4  ;;  %81 = vmatpush.xpose.msra.mxu1 %v27_v4 }
  0x16   :  { %43 = vmatpush.xpose.msra.mxu0 %v26_v5  ;;  %82 = vmatpush.xpose.msra.mxu1 %v26_v5 }
  0x1a   :  { %44 = vmatpush.xpose.msra.mxu0 %v25_v6  ;;  %83 = vmatpush.xpose.msra.mxu1 %v25_v6 }
  0x1e   :  { %45 = vmatpush.xpose.msra.mxu0 %v24_v7  ;;  %84 = vmatpush.xpose.msra.mxu1 %v24_v7 }
  0x22   :  { %46 = vmatpush.xpose.msra.mxu0 %v23_v9  ;;  %85 = vmatpush.xpose.msra.mxu1 %v23_v9 }
  0x26   :  { %47 = vmatpush.xpose.msra.mxu0 %v22_v11  ;;  %86 = vmatpush.xpose.msra.mxu1 %v22_v11 }
  0x2a   :  { %48 = vmatpush.xpose.msra.mxu0 %v21_v13  ;;  %87 = vmatpush.xpose.msra.mxu1 %v21_v13 }
  0x2e   :  { %49 = vmatpush.xpose.msra.mxu0 %v20_v15  ;;  %88 = vmatpush.xpose.msra.mxu1 %v20_v15 }
  0x32   :  { %50 = vmatpush.xpose.msra.mxu0 %v19_v16  ;;  %89 = vmatpush.xpose.msra.mxu1 %v19_v16 }
  0x36   :  { %51 = vmatpush.xpose.msra.mxu0 %v18_v17  ;;  %90 = vmatpush.xpose.msra.mxu1 %v18_v17 }
  0x3a   :  { %52 = vmatpush.xpose.msra.mxu0 %v17_v18  ;;  %91 = vmatpush.xpose.msra.mxu1 %v17_v18 }
  0x3e   :  { %53 = vmatpush.xpose.msra.mxu0 %v16_v19  ;;  %92 = vmatpush.xpose.msra.mxu1 %v16_v19 }
  0x41   :  { %54 = vmatmul.f32.vlgmr.msra.gmra.mxu0 %v14_v8  ;;  %57 = vmatmul.f32.vlgmr.msra.gmra.mxu1 %v15_v12 }
  0x7a   :  { %v35_v20 = vpop.xlane.xlu0 %34 }
  0x7b   :  { %v65_v26 = vadd.f32 %v93_v22, %v35_v20 }
  0x82   :  { %v37_v21 = vpop.xlane.xlu0 %36 }
  0x83   :  { %v66_v23 = vadd.f32 %v93_v22, %v37_v21 }
  0xbe   :  { %v55_v24 = vpop.f32.mrf.mxu0  ;;  %v58_v25 = vpop.f32.mrf.mxu1 }
  0xbf   :  { %v67_v27 = vmul.f32 2.0, %v55_v24  ;;  %v68_v28 = vmul.f32 2.0, %v58_v25 }
  0xc1   :  { %v69_v29 = vsub.f32 %v65_v26, %v67_v27  ;;  %v70_v30 = vsub.f32 %v66_v23, %v68_v28 }
  0xc3   :  { %71 = vst [vmem:[%s180_s3] sm:$0xff] %v69_v29 }
  0xc4   :  { %72 = vst [vmem:[%s180_s3 + $0x8] sm:$0xff] %v70_v30 }

</bundles_post_ra>
